<compile_context>
chip_gen: v6e
topology: v6e:2x2x1
jax: 0.10.0
libtpu: 0.0.40
codegen_flags: <defaults>
</compile_context>

<pallas_src>
import functools
import math

import numpy as np

import jax
import jax.numpy as jnp
from jax.experimental import pallas as pl
from jax.experimental.pallas import tpu as pltpu

# ---------------------------------------------------------------------------
# Model hyper-parameters (the "config")
# ---------------------------------------------------------------------------
B            = 2      # batch
NUM_SENTENCE = 4      # sentences per image (must be > 1)
DIM_FT       = 32     # image feature dim
DIM_HIDDEN   = 32     # sentence-encoder hidden dim
DIM_KERNEL   = 16     # dim_kernel
NUM_KERNEL   = 8      # num_kernel
DIM_ALL      = DIM_KERNEL * NUM_KERNEL   # 128
MAX_STEP     = 8      # tokens per sentence
VOCAB        = 50
NOISE_P      = 0.0    # dropout prob (identity at eval)

BS   = B * NUM_SENTENCE                  # 8   sentence rows
BSS  = B * NUM_SENTENCE * NUM_SENTENCE   # 32  pairwise (i, j) rows
OUT_LANES = 8                            # packed output: [out | out_img | out_sent | pad]

assert NUM_SENTENCE > 1, "dist2sent divides by (num_sentence - 1)"


# ---------------------------------------------------------------------------
# Pallas kernel: whole `predict` hot path, all batches in one invocation
# ---------------------------------------------------------------------------
def _disc_kernel(fts_ref, hid_ref,
                 w_img_ref, w_cat_ref, ksum_ref,
                 xlr_ref, red_ref, w_h_ref, b_h_ref,
                 out_ref):
    # --- embeddings (bias-free linears; dropout p=0 is identity) -----------
    # fts_ref already holds fts repeated per sentence -> (BS, DIM_FT).
    img_e  = jnp.dot(fts_ref[...], w_img_ref[...],
                     preferred_element_type=jnp.float32)          # (BS, 128)
    sent_e = jnp.dot(hid_ref[...], w_cat_ref[...],
                     preferred_element_type=jnp.float32)          # (BS, 256) = [s2i | s2s]
    s2i_e = sent_e[:, :DIM_ALL]                                   # (BS, 128)
    s2s_e = sent_e[:, DIM_ALL:]                                   # (BS, 128)

    # --- pairwise sentence-sentence products via constant selection matmul -
    # rows [0:BSS]  = left  factor  s2s[b, i]  for r = b*NS*NS + i*NS + j
    # rows [BSS: ]  = right factor  s2s[b, j]
    lr = jnp.dot(xlr_ref[...], s2s_e,
                 preferred_element_type=jnp.float32)              # (2*BSS, 128)
    prod_ss = lr[:BSS, :] * lr[BSS:, :]                           # (BSS, 128)
    prod_im = img_e * s2i_e                                       # (BS, 128)

    # --- all per-kernel dot products in ONE matmul + ONE tanh --------------
    # ksum_ref is the 0/1 block-sum matrix pre-scaled by 1/sqrt(dim_kernel).
    prod = jnp.concatenate([prod_im, prod_ss], axis=0)            # (BS+BSS, 128)
    sims = jnp.tanh(jnp.dot(prod, ksum_ref[...],
                            preferred_element_type=jnp.float32))  # (BS+BSS, NK)

    d2i = sims[:BS, :]                                            # (BS, NK)
    # off-diagonal average over j (within each batch) as a constant matmul
    d2s = jnp.dot(red_ref[...], sims[BS:, :],
                  preferred_element_type=jnp.float32)             # (BS, NK)

    # --- both heads with one block-diagonal matmul --------------------------
    d  = jnp.concatenate([d2i, d2s], axis=1)                      # (BS, 2*NK)
    oh = jnp.dot(d, w_h_ref[...],
                 preferred_element_type=jnp.float32) + b_h_ref[...]   # (BS, 4)
    out_img  = oh[:, 0:2]
    out_sent = oh[:, 2:4]
    out = out_img + out_sent

    # --- 2-class softmax as a sigmoid (no cross-lane reductions) ------------
    def sm2(z):                                                   # z: (BS, 2)
        p1 = 1.0 / (1.0 + jnp.exp(z[:, 0:1] - z[:, 1:2]))
        return jnp.concatenate([1.0 - p1, p1], axis=1)

    packed = jnp.concatenate(
        [sm2(out), sm2(out_img), sm2(out_sent),
         jnp.zeros((BS, OUT_LANES - 6), jnp.float32)], axis=1)    # (BS, 8)
    out_ref[...] = packed                                         # single store


# ---------------------------------------------------------------------------
# One-time parameter packing (constant folding on parameters, not per-call)
# ---------------------------------------------------------------------------
def pack_params(params):
    ns, nk, dk = NUM_SENTENCE, NUM_KERNEL, DIM_KERNEL

    # fused [sent_img_embed | sent_sent_embed] weight: (DIM_HIDDEN, 2*DIM_ALL)
    w_cat = jnp.concatenate([params["w_si"], params["w_ss"]], axis=1)

    # block-sum matrix, pre-scaled by 1/sqrt(dim_kernel)
    ksum_s = (np.arange(DIM_ALL)[:, None] // dk == np.arange(nk)[None, :])
    ksum_s = jnp.asarray(ksum_s.astype(np.float32) / math.sqrt(dk))

    # pairwise (i, j) expansion selectors: row r = b*NS*NS + i*NS + j
    r = np.arange(BSS)
    b_idx = r // (ns * ns)
    i_idx = (r // ns) % ns
    j_idx = r % ns
    expand_l = np.zeros((BSS, BS), np.float32)
    expand_r = np.zeros((BSS, BS), np.float32)
    expand_l[r, b_idx * ns + i_idx] = 1.0
    expand_r[r, b_idx * ns + j_idx] = 1.0
    expand_lr = jnp.asarray(np.concatenate([expand_l, expand_r], axis=0))  # (2*BSS, BS)

    # off-diagonal average over j within each batch block
    reduce_m = np.zeros((BS, BSS), np.float32)
    reduce_m[b_idx * ns + i_idx, r] = (j_idx != i_idx).astype(np.float32) / (ns - 1)
    reduce_m = jnp.asarray(reduce_m)                                       # (BS, BSS)

    # block-diagonal head: [d2i | d2s] @ w_heads = [out_img | out_sent]
    w_heads = np.zeros((2 * nk, 4), np.float32)
    w_heads[:nk, 0:2] = np.asarray(params["w_fi"])
    w_heads[nk:, 2:4] = np.asarray(params["w_fs"])
    w_heads = jnp.asarray(w_heads)
    b_heads = jnp.concatenate([params["b_fi"], params["b_fs"]], axis=1)    # (1, 4)

    return dict(w_img=params["w_img"], w_cat=w_cat, ksum_s=ksum_s,
                expand_lr=expand_lr, reduce_m=reduce_m,
                w_heads=w_heads, b_heads=b_heads)


# ---------------------------------------------------------------------------
# Wrapper (single pallas_call, single grid step, single packed output)
# ---------------------------------------------------------------------------
def _full2(shape):
    return pl.BlockSpec(shape, lambda i: (0, 0))


@jax.jit
def discriminator_forward_val(fts, hidden, packed):
    """fts: (B, DIM_FT), hidden: (B*NS, DIM_HIDDEN).
    Returns (predicts, img_predicts, sent_predicts), each (B*NS, 2)."""
    # layout only: repeat image features per sentence so the kernel stays 2-D
    fts_rep = jnp.repeat(fts, NUM_SENTENCE, axis=0)                # (BS, DIM_FT)

    res = pl.pallas_call(
        _disc_kernel,
        out_shape=jax.ShapeDtypeStruct((BS, OUT_LANES), jnp.float32),
        grid=(1,),
        in_specs=[
            _full2((BS, DIM_FT)),
            _full2((BS, DIM_HIDDEN)),
            _full2((DIM_FT, DIM_ALL)),
            _full2((DIM_HIDDEN, 2 * DIM_ALL)),
            _full2((DIM_ALL, NUM_KERNEL)),
            _full2((2 * BSS, BS)),
            _full2((BS, BSS)),
            _full2((2 * NUM_KERNEL, 4)),
            _full2((1, 4)),
        ],
        out_specs=_full2((BS, OUT_LANES)),
        compiler_params=pltpu.CompilerParams(
            dimension_semantics=("arbitrary",)),
    )(fts_rep, hidden,
      packed["w_img"], packed["w_cat"], packed["ksum_s"],
      packed["expand_lr"], packed["reduce_m"],
      packed["w_heads"], packed["b_heads"])

    return res[:, 0:2], res[:, 2:4], res[:, 4:6]


# ---------------------------------------------------------------------------
# Sentence "encoder" stand-in + reference implementation (plain JAX)
# ---------------------------------------------------------------------------
def encode_sentences(sents, lens, embedding):
    # TODO(synk): encoder.rnn.Encoder is an external RNN module not defined in
    # the reference file; replaced by a deterministic masked mean-pooled
    # token embedding producing (B*NS, DIM_HIDDEN).
    emb = embedding[sents]                                  # (B*NS, T, DIM_HIDDEN)
    mask = (jnp.arange(MAX_STEP)[None, :] < lens[:, None]).astype(jnp.float32)
    pooled = (emb * mask[:, :, None]).sum(axis=1) / lens[:, None].astype(jnp.float32)
    return pooled


def reference_forward_val(fts, hidden, params):
    inv = 1.0 / math.sqrt(DIM_KERNEL)
    img_e = fts @ params["w_img"]                                        # (B, K)
    s2i = (hidden @ params["w_si"]).reshape(B, NUM_SENTENCE, DIM_ALL)
    s2s = (hidden @ params["w_ss"]).reshape(B, NUM_SENTENCE, DIM_ALL)

    d2i = (img_e[:, None, :] * s2i).reshape(B, NUM_SENTENCE, NUM_KERNEL, DIM_KERNEL)
    d2i = jnp.tanh(d2i.sum(-1) * inv)                                    # (B, NS, NK)

    ss = (s2s[:, :, None, :] * s2s[:, None, :, :]).reshape(
        B, NUM_SENTENCE, NUM_SENTENCE, NUM_KERNEL, DIM_KERNEL)
    ss = jnp.tanh(ss.sum(-1) * inv)                                      # (B, NS, NS, NK)
    diag = jnp.einsum('biik->bik', ss)
    d2s = (ss.sum(axis=2) - diag) / (NUM_SENTENCE - 1)                   # (B, NS, NK)

    out_img = d2i @ params["w_fi"] + params["b_fi"][0]
    out_sent = d2s @ params["w_fs"] + params["b_fs"][0]
    out = out_img + out_sent
    sm = lambda z: jax.nn.softmax(z, axis=-1).reshape(B * NUM_SENTENCE, 2)
    return sm(out), sm(out_img), sm(out_sent)


# ---------------------------------------------------------------------------
# Main
# ---------------------------------------------------------------------------
if __name__ == "__main__":
    key = jax.random.PRNGKey(0)
    keys = jax.random.split(key, 10)

    # Deterministic synthetic parameters (shapes follow the module __init__).
    params = {
        "w_img": jax.random.normal(keys[0], (DIM_FT, DIM_ALL), jnp.float32) * 0.1,
        "w_si":  jax.random.normal(keys[1], (DIM_HIDDEN, DIM_ALL), jnp.float32) * 0.1,
        "w_ss":  jax.random.normal(keys[2], (DIM_HIDDEN, DIM_ALL), jnp.float32) * 0.1,
        "w_fi":  jax.random.normal(keys[3], (NUM_KERNEL, 2), jnp.float32) * 0.1,
        "b_fi":  jax.random.normal(keys[4], (1, 2), jnp.float32) * 0.1,
        "w_fs":  jax.random.normal(keys[5], (NUM_KERNEL, 2), jnp.float32) * 0.1,
        "b_fs":  jax.random.normal(keys[6], (1, 2), jnp.float32) * 0.1,
    }
    embedding = jax.random.normal(keys[7], (VOCAB, DIM_HIDDEN), jnp.float32) * 0.5

    # Inputs: fts (B, dim_ft), sents (B*NS, max_step), lens (B*NS,)
    fts = jax.random.normal(keys[8], (B, DIM_FT), jnp.float32)
    sents = jax.random.randint(keys[9], (B * NUM_SENTENCE, MAX_STEP), 0, VOCAB, jnp.int32)
    lens = jnp.array([3, 8, 5, 6, 2, 7, 4, 8], dtype=jnp.int32)

    hidden = encode_sentences(sents, lens, embedding)        # (B*NS, DIM_HIDDEN)

    packed = pack_params(params)                             # one-time constant fold
    preds, preds_img, preds_sent = discriminator_forward_val(fts, hidden, packed)
    jax.block_until_ready((preds, preds_img, preds_sent))

    # Silent correctness check against a pure-JAX reference of `predict`.
    r_pred, r_img, r_sent = reference_forward_val(fts, hidden, params)
    assert jnp.allclose(preds, r_pred, atol=1e-5), "predicts mismatch"
    assert jnp.allclose(preds_img, r_img, atol=1e-5), "img_predicts mismatch"
    assert jnp.allclose(preds_sent, r_sent, atol=1e-5), "sent_predicts mismatch"

    print("KERNEL_OK")
</pallas_src>

<mosaic_0001>
module attributes {stable_mosaic.version = 11 : i64} {
  func.func @_disc_kernel(%arg0: i32, %arg1: memref<8x32xf32, #tpu.memory_space<vmem>>, %arg2: memref<8x32xf32, #tpu.memory_space<vmem>>, %arg3: memref<32x128xf32, #tpu.memory_space<vmem>>, %arg4: memref<32x256xf32, #tpu.memory_space<vmem>>, %arg5: memref<128x8xf32, #tpu.memory_space<vmem>>, %arg6: memref<64x8xf32, #tpu.memory_space<vmem>>, %arg7: memref<8x32xf32, #tpu.memory_space<vmem>>, %arg8: memref<16x4xf32, #tpu.memory_space<vmem>>, %arg9: memref<1x4xf32, #tpu.memory_space<vmem>>, %arg10: memref<8x8xf32, #tpu.memory_space<vmem>>) attributes {dimension_semantics = [#tpu.dimension_semantics<arbitrary>], iteration_bounds = array<i64: 1>, scalar_prefetch = 0 : i64, scratch_operands = 0 : i64, tpu.core_type = #tpu.core_type<tc>, window_params = [{pipeline_mode = #tpu.pipeline_mode<synchronous>, transform_indices = @transform_0, window_bounds = array<i64: 8, 32>}, {pipeline_mode = #tpu.pipeline_mode<synchronous>, transform_indices = @transform_1, window_bounds = array<i64: 8, 32>}, {pipeline_mode = #tpu.pipeline_mode<synchronous>, transform_indices = @transform_2, window_bounds = array<i64: 32, 128>}, {pipeline_mode = #tpu.pipeline_mode<synchronous>, transform_indices = @transform_3, window_bounds = array<i64: 32, 256>}, {pipeline_mode = #tpu.pipeline_mode<synchronous>, transform_indices = @transform_4, window_bounds = array<i64: 128, 8>}, {pipeline_mode = #tpu.pipeline_mode<synchronous>, transform_indices = @transform_5, window_bounds = array<i64: 64, 8>}, {pipeline_mode = #tpu.pipeline_mode<synchronous>, transform_indices = @transform_6, window_bounds = array<i64: 8, 32>}, {pipeline_mode = #tpu.pipeline_mode<synchronous>, transform_indices = @transform_7, window_bounds = array<i64: 16, 4>}, {pipeline_mode = #tpu.pipeline_mode<synchronous>, transform_indices = @transform_8, window_bounds = array<i64: 1, 4>}, {pipeline_mode = #tpu.pipeline_mode<synchronous>, transform_indices = @transform_9, window_bounds = array<i64: 8, 8>}]} {
    %c0 = arith.constant 0 : index
    %c0_0 = arith.constant 0 : index
    %0 = vector.load %arg1[%c0, %c0_0] : memref<8x32xf32, #tpu.memory_space<vmem>>, vector<8x32xf32>
    %c0_1 = arith.constant 0 : index
    %c0_2 = arith.constant 0 : index
    %1 = vector.load %arg3[%c0_1, %c0_2] : memref<32x128xf32, #tpu.memory_space<vmem>>, vector<32x128xf32>
    %cst = arith.constant dense<0.000000e+00> : vector<8x128xf32>
    %2 = tpu.matmul %0, %1, %cst {dimension_numbers = #tpu.dot_dimension_numbers<[1], [0], [0], [1], [0, 0, 1, 1], [], []>} : vector<8x32xf32>, vector<32x128xf32>, vector<8x128xf32> -> vector<8x128xf32>
    %c0_3 = arith.constant 0 : index
    %c0_4 = arith.constant 0 : index
    %3 = vector.load %arg2[%c0_3, %c0_4] : memref<8x32xf32, #tpu.memory_space<vmem>>, vector<8x32xf32>
    %c0_5 = arith.constant 0 : index
    %c0_6 = arith.constant 0 : index
    %4 = vector.load %arg4[%c0_5, %c0_6] : memref<32x256xf32, #tpu.memory_space<vmem>>, vector<32x256xf32>
    %cst_7 = arith.constant dense<0.000000e+00> : vector<8x256xf32>
    %5 = tpu.matmul %3, %4, %cst_7 {dimension_numbers = #tpu.dot_dimension_numbers<[1], [0], [0], [1], [0, 0, 1, 1], [], []>} : vector<8x32xf32>, vector<32x256xf32>, vector<8x256xf32> -> vector<8x256xf32>
    %6 = vector.extract_strided_slice %5 {offsets = [0, 0], sizes = [8, 128], strides = [1, 1]} : vector<8x256xf32> to vector<8x128xf32>
    %7 = vector.extract_strided_slice %5 {offsets = [0, 128], sizes = [8, 128], strides = [1, 1]} : vector<8x256xf32> to vector<8x128xf32>
    %c0_8 = arith.constant 0 : index
    %c0_9 = arith.constant 0 : index
    %8 = vector.load %arg6[%c0_8, %c0_9] : memref<64x8xf32, #tpu.memory_space<vmem>>, vector<64x8xf32>
    %cst_10 = arith.constant dense<0.000000e+00> : vector<64x128xf32>
    %9 = tpu.matmul %8, %7, %cst_10 {dimension_numbers = #tpu.dot_dimension_numbers<[1], [0], [0], [1], [0, 0, 1, 1], [], []>} : vector<64x8xf32>, vector<8x128xf32>, vector<64x128xf32> -> vector<64x128xf32>
    %10 = vector.extract_strided_slice %9 {offsets = [0, 0], sizes = [32, 128], strides = [1, 1]} : vector<64x128xf32> to vector<32x128xf32>
    %11 = vector.extract_strided_slice %9 {offsets = [32, 0], sizes = [32, 128], strides = [1, 1]} : vector<64x128xf32> to vector<32x128xf32>
    %12 = arith.mulf %10, %11 : vector<32x128xf32>
    %13 = arith.mulf %2, %6 : vector<8x128xf32>
    %14 = tpu.concatenate %13, %12 in 0 : vector<8x128xf32>, vector<32x128xf32> -> vector<40x128xf32>
    %c0_11 = arith.constant 0 : index
    %c0_12 = arith.constant 0 : index
    %15 = vector.load %arg5[%c0_11, %c0_12] : memref<128x8xf32, #tpu.memory_space<vmem>>, vector<128x8xf32>
    %cst_13 = arith.constant dense<0.000000e+00> : vector<40x8xf32>
    %16 = tpu.matmul %14, %15, %cst_13 {dimension_numbers = #tpu.dot_dimension_numbers<[1], [0], [0], [1], [0, 0, 1, 1], [], []>} : vector<40x128xf32>, vector<128x8xf32>, vector<40x8xf32> -> vector<40x8xf32>
    %17 = math.tanh %16 : vector<40x8xf32>
    %18 = vector.extract_strided_slice %17 {offsets = [0, 0], sizes = [8, 8], strides = [1, 1]} : vector<40x8xf32> to vector<8x8xf32>
    %c0_14 = arith.constant 0 : index
    %c0_15 = arith.constant 0 : index
    %19 = vector.load %arg7[%c0_14, %c0_15] : memref<8x32xf32, #tpu.memory_space<vmem>>, vector<8x32xf32>
    %20 = vector.extract_strided_slice %17 {offsets = [8, 0], sizes = [32, 8], strides = [1, 1]} : vector<40x8xf32> to vector<32x8xf32>
    %cst_16 = arith.constant dense<0.000000e+00> : vector<8x8xf32>
    %21 = tpu.matmul %19, %20, %cst_16 {dimension_numbers = #tpu.dot_dimension_numbers<[1], [0], [0], [1], [0, 0, 1, 1], [], []>} : vector<8x32xf32>, vector<32x8xf32>, vector<8x8xf32> -> vector<8x8xf32>
    %22 = tpu.concatenate %18, %21 in 1 : vector<8x8xf32>, vector<8x8xf32> -> vector<8x16xf32>
    %c0_17 = arith.constant 0 : index
    %c0_18 = arith.constant 0 : index
    %23 = vector.load %arg8[%c0_17, %c0_18] : memref<16x4xf32, #tpu.memory_space<vmem>>, vector<16x4xf32>
    %cst_19 = arith.constant dense<0.000000e+00> : vector<8x4xf32>
    %24 = tpu.matmul %22, %23, %cst_19 {dimension_numbers = #tpu.dot_dimension_numbers<[1], [0], [0], [1], [0, 0, 1, 1], [], []>} : vector<8x16xf32>, vector<16x4xf32>, vector<8x4xf32> -> vector<8x4xf32>
    %c0_20 = arith.constant 0 : index
    %c0_21 = arith.constant 0 : index
    %25 = vector.load %arg9[%c0_20, %c0_21] : memref<1x4xf32, #tpu.memory_space<vmem>>, vector<1x4xf32>
    %26 = vector.broadcast %25 : vector<1x4xf32> to vector<8x4xf32>
    %27 = arith.addf %24, %26 : vector<8x4xf32>
    %28 = vector.extract_strided_slice %27 {offsets = [0, 0], sizes = [8, 2], strides = [1, 1]} : vector<8x4xf32> to vector<8x2xf32>
    %29 = vector.extract_strided_slice %27 {offsets = [0, 2], sizes = [8, 2], strides = [1, 1]} : vector<8x4xf32> to vector<8x2xf32>
    %30 = arith.addf %28, %29 : vector<8x2xf32>
    %31 = vector.extract_strided_slice %30 {offsets = [0, 0], sizes = [8, 1], strides = [1, 1]} : vector<8x2xf32> to vector<8x1xf32>
    %32 = vector.extract_strided_slice %30 {offsets = [0, 1], sizes = [8, 1], strides = [1, 1]} : vector<8x2xf32> to vector<8x1xf32>
    %33 = arith.subf %31, %32 : vector<8x1xf32>
    %34 = math.exp %33 : vector<8x1xf32>
    %cst_22 = arith.constant 1.000000e+00 : f32
    %35 = vector.broadcast %cst_22 : f32 to vector<8x1xf32>
    %36 = arith.addf %35, %34 : vector<8x1xf32>
    %cst_23 = arith.constant 1.000000e+00 : f32
    %37 = vector.broadcast %cst_23 : f32 to vector<8x1xf32>
    %38 = arith.divf %37, %36 : vector<8x1xf32>
    %cst_24 = arith.constant 1.000000e+00 : f32
    %39 = vector.broadcast %cst_24 : f32 to vector<8x1xf32>
    %40 = arith.subf %39, %38 : vector<8x1xf32>
    %41 = tpu.concatenate %40, %38 in 1 : vector<8x1xf32>, vector<8x1xf32> -> vector<8x2xf32>
    %42 = vector.extract_strided_slice %28 {offsets = [0, 0], sizes = [8, 1], strides = [1, 1]} : vector<8x2xf32> to vector<8x1xf32>
    %43 = vector.extract_strided_slice %28 {offsets = [0, 1], sizes = [8, 1], strides = [1, 1]} : vector<8x2xf32> to vector<8x1xf32>
    %44 = arith.subf %42, %43 : vector<8x1xf32>
    %45 = math.exp %44 : vector<8x1xf32>
    %cst_25 = arith.constant 1.000000e+00 : f32
    %46 = vector.broadcast %cst_25 : f32 to vector<8x1xf32>
    %47 = arith.addf %46, %45 : vector<8x1xf32>
    %cst_26 = arith.constant 1.000000e+00 : f32
    %48 = vector.broadcast %cst_26 : f32 to vector<8x1xf32>
    %49 = arith.divf %48, %47 : vector<8x1xf32>
    %cst_27 = arith.constant 1.000000e+00 : f32
    %50 = vector.broadcast %cst_27 : f32 to vector<8x1xf32>
    %51 = arith.subf %50, %49 : vector<8x1xf32>
    %52 = tpu.concatenate %51, %49 in 1 : vector<8x1xf32>, vector<8x1xf32> -> vector<8x2xf32>
    %53 = vector.extract_strided_slice %29 {offsets = [0, 0], sizes = [8, 1], strides = [1, 1]} : vector<8x2xf32> to vector<8x1xf32>
    %54 = vector.extract_strided_slice %29 {offsets = [0, 1], sizes = [8, 1], strides = [1, 1]} : vector<8x2xf32> to vector<8x1xf32>
    %55 = arith.subf %53, %54 : vector<8x1xf32>
    %56 = math.exp %55 : vector<8x1xf32>
    %cst_28 = arith.constant 1.000000e+00 : f32
    %57 = vector.broadcast %cst_28 : f32 to vector<8x1xf32>
    %58 = arith.addf %57, %56 : vector<8x1xf32>
    %cst_29 = arith.constant 1.000000e+00 : f32
    %59 = vector.broadcast %cst_29 : f32 to vector<8x1xf32>
    %60 = arith.divf %59, %58 : vector<8x1xf32>
    %cst_30 = arith.constant 1.000000e+00 : f32
    %61 = vector.broadcast %cst_30 : f32 to vector<8x1xf32>
    %62 = arith.subf %61, %60 : vector<8x1xf32>
    %63 = tpu.concatenate %62, %60 in 1 : vector<8x1xf32>, vector<8x1xf32> -> vector<8x2xf32>
    %cst_31 = arith.constant 0.000000e+00 : f32
    %64 = vector.broadcast %cst_31 : f32 to vector<8x2xf32>
    %65 = tpu.concatenate %41, %52, %63, %64 in 1 : vector<8x2xf32>, vector<8x2xf32>, vector<8x2xf32>, vector<8x2xf32> -> vector<8x8xf32>
    %c0_32 = arith.constant 0 : index
    %c0_33 = arith.constant 0 : index
    %66 = vector.load %arg10[%c0_32, %c0_33] : memref<8x8xf32, #tpu.memory_space<vmem>>, vector<8x8xf32>
    tpu.vector_store %arg10[%c0_32, %c0_33], %65 {strides = array<i32>} : memref<8x8xf32, #tpu.memory_space<vmem>>, vector<8x8xf32>,
    return
  }
  func.func @transform_0(%arg0: i32) -> (i32, i32) {
    %c0_i32 = arith.constant 0 : i32
    %c0_i32_0 = arith.constant 0 : i32
    %c0_i32_1 = arith.constant 0 : i32
    return %c0_i32, %c0_i32_0 : i32, i32
  }
  func.func @transform_1(%arg0: i32) -> (i32, i32) {
    %c0_i32 = arith.constant 0 : i32
    %c0_i32_0 = arith.constant 0 : i32
    %c0_i32_1 = arith.constant 0 : i32
    return %c0_i32, %c0_i32_0 : i32, i32
  }
  func.func @transform_2(%arg0: i32) -> (i32, i32) {
    %c0_i32 = arith.constant 0 : i32
    %c0_i32_0 = arith.constant 0 : i32
    %c0_i32_1 = arith.constant 0 : i32
    return %c0_i32, %c0_i32_0 : i32, i32
  }
  func.func @transform_3(%arg0: i32) -> (i32, i32) {
    %c0_i32 = arith.constant 0 : i32
    %c0_i32_0 = arith.constant 0 : i32
    %c0_i32_1 = arith.constant 0 : i32
    return %c0_i32, %c0_i32_0 : i32, i32
  }
  func.func @transform_4(%arg0: i32) -> (i32, i32) {
    %c0_i32 = arith.constant 0 : i32
    %c0_i32_0 = arith.constant 0 : i32
    %c0_i32_1 = arith.constant 0 : i32
    return %c0_i32, %c0_i32_0 : i32, i32
  }
  func.func @transform_5(%arg0: i32) -> (i32, i32) {
    %c0_i32 = arith.constant 0 : i32
    %c0_i32_0 = arith.constant 0 : i32
    %c0_i32_1 = arith.constant 0 : i32
    return %c0_i32, %c0_i32_0 : i32, i32
  }
  func.func @transform_6(%arg0: i32) -> (i32, i32) {
    %c0_i32 = arith.constant 0 : i32
    %c0_i32_0 = arith.constant 0 : i32
    %c0_i32_1 = arith.constant 0 : i32
    return %c0_i32, %c0_i32_0 : i32, i32
  }
  func.func @transform_7(%arg0: i32) -> (i32, i32) {
    %c0_i32 = arith.constant 0 : i32
    %c0_i32_0 = arith.constant 0 : i32
    %c0_i32_1 = arith.constant 0 : i32
    return %c0_i32, %c0_i32_0 : i32, i32
  }
  func.func @transform_8(%arg0: i32) -> (i32, i32) {
    %c0_i32 = arith.constant 0 : i32
    %c0_i32_0 = arith.constant 0 : i32
    %c0_i32_1 = arith.constant 0 : i32
    return %c0_i32, %c0_i32_0 : i32, i32
  }
  func.func @transform_9(%arg0: i32) -> (i32, i32) {
    %c0_i32 = arith.constant 0 : i32
    %c0_i32_0 = arith.constant 0 : i32
    %c0_i32_1 = arith.constant 0 : i32
    return %c0_i32, %c0_i32_0 : i32, i32
  }
}

</mosaic_0001>

<bundles_post_ra>
// kernel: discriminator_forward_val.1
= control target key start
LH: loop header
LB: loop body
LE: loop exit
PB: predicated region body
PF: predicated region fallthrough
CT: control target
= control target key end

     0   :  { %v846_v0 = vmov 0.0   ;;  %vm847_vm0 = vmmov 0   ;;  %vm37_vm1 = vcmask 261120   ;;  %vm202_vm2 = vcmask 64512   ;;  %s848_s15 = smov 8   ;;  %s850_s18 = smov 126   ;;  %s1089_s2 = inlined_call_operand.vmem [shape: f32[32,128], index: 2, kind: input, shape index: {}]   ;;  %s1090_s4 = inlined_call_operand.vmem [shape: f32[128,8], index: 4, kind: input, shape index: {}]   ;;  %s1091_s0 = inlined_call_operand.vmem [shape: f32[8,32], index: 0, kind: input, shape index: {}]   ;;  %s1092_s3 = inlined_call_operand.vmem [shape: f32[32,256], index: 3, kind: input, shape index: {}]   ;;  %s1093_s1 = inlined_call_operand.vmem [shape: f32[8,32], index: 1, kind: input, shape index: {}]   ;;  %s1094_s5 = inlined_call_operand.vmem [shape: f32[64,8], index: 5, kind: input, shape index: {}]   ;;  %s1095_s6 = inlined_call_operand.vmem [shape: f32[8,32], index: 6, kind: input, shape index: {}]   ;;  %s1096_s7 = inlined_call_operand.vmem [shape: f32[16,4], index: 7, kind: input, shape index: {}]   ;;  %s1097_s8 = inlined_call_operand.vmem [shape: f32[1,4], index: 8, kind: input, shape index: {}]   ;;  %s1098_s9 = inlined_call_operand.vmem [shape: f32[8,8], index: 9, kind: output, shape index: {}]  }
   0x1   :  { %730 = vmatprep.subr.mxu0 %v846_v0  ;;  %v36_v1 = vld [vmem:[%s1089_s2 + $0x18] sm:$0xff]  ;;  %v35_v2 = vld [vmem:[%s1089_s2 + $0x10] sm:$0xff]  ;;  %738 = vmatprep.mubr.msk.f32.mxu0 %vm847_vm0, %v846_v0  ;;  %v34_v3 = vld [vmem:[%s1089_s2 + $0x8] sm:$0xff]  ;;  %vm536_vm3 = vcmask 130048   ;;  %s851_s19 = smov 1   ;;  %vm630_vm4 = vcmask 7168  }
   0x2   :  { %731 = vmatpush3.msra.mxu0 %v36_v1  ;;  %755 = vmatprep.subr.mxu1 %v846_v0  ;;  %v33_v4 = vld [vmem:[%s1089_s2] sm:$0xff]  ;;  %v352_v5 = vld [vmem:[%s1090_s4 + $0x78] sm:$0xff]  ;;  %v351_v8 = vld [vmem:[%s1090_s4 + $0x70] sm:$0xff]  ;;  %s853_s20 = smov 4   ;;  %vm663_vm5 = vcmask 15360   ;;  %vm665_vm6 = vcmask 31744  }
   0x3   :  { %732 = vmatprep.subr.mxu0 %v846_v0  ;;  %787 = vmatprep.mubr.msk.f32.mxu1 %vm847_vm0, %v846_v0  ;;  %v32_v6 = vld [vmem:[%s1091_s0] sm:$0xff]  ;;  %v119_v7 = vld [vmem:[%s1092_s3 + $0x38] sm:$0xff]  ;;  %v118_v9 = vld [vmem:[%s1092_s3 + $0x30] sm:$0xff]  ;;  %vm667_vm7 = vcmask 48128  }
   0x4   :  { %733 = vmatpush3.msra.mxu0 %v35_v2  ;;  %756 = vmatpush3.msra.mxu1 %v352_v5  ;;  %v117_v10 = vld [vmem:[%s1092_s3 + $0x28] sm:$0xff]  ;;  %v116_v11 = vld [vmem:[%s1092_s3 + $0x20] sm:$0xff]  ;;  %v115_v13 = vld [vmem:[%s1092_s3 + $0x18] sm:$0xff] }
   0x5   :  { %734 = vmatprep.subr.mxu0 %v846_v0  ;;  %757 = vmatprep.subr.mxu1 %v846_v0  ;;  %v350_v12 = vld [vmem:[%s1090_s4 + $0x68] sm:$0xff]  ;;  %v114_v14 = vld [vmem:[%s1092_s3 + $0x10] sm:$0xff]  ;;  %v349_v15 = vld [vmem:[%s1090_s4 + $0x60] sm:$0xff] }
   0x6   :  { %735 = vmatpush3.msra.mxu0 %v34_v3  ;;  %758 = vmatpush3.msra.mxu1 %v351_v8  ;;  %v113_v16 = vld [vmem:[%s1092_s3 + $0x8] sm:$0xff]  ;;  %v112_v17 = vld [vmem:[%s1092_s3] sm:$0xff]  ;;  %v348_v18 = vld [vmem:[%s1090_s4 + $0x58] sm:$0xff] }
   0x7   :  { %736 = vmatprep.subr.mxu0 %v846_v0  ;;  %759 = vmatprep.subr.mxu1 %v846_v0  ;;  %v111_v19 = vld [vmem:[%s1093_s1] sm:$0xff]  ;;  %v347_v20 = vld [vmem:[%s1090_s4 + $0x50] sm:$0xff]  ;;  %v346_v21 = vld [vmem:[%s1090_s4 + $0x48] sm:$0xff] }
   0x8   :  { %737 = vmatpush3.msra.mxu0 %v33_v4  ;;  %760 = vmatpush3.msra.mxu1 %v350_v12  ;;  %v345_v22 = vld [vmem:[%s1090_s4 + $0x40] sm:$0xff]  ;;  %v344_v23 = vld [vmem:[%s1090_s4 + $0x38] sm:$0xff]  ;;  %v343_v24 = vld [vmem:[%s1090_s4 + $0x30] sm:$0xff] }
   0x9   :  { %739 = vmatmul.mubr.msk.f32.vlgmr.msra.gmra.mxu0 %vm37_vm1, %v32_v6  ;;  %147 = vmatprep.subr.mxu0 %v119_v7  ;;  %v342_v25 = vld [vmem:[%s1090_s4 + $0x28] sm:$0xff]  ;;  %v341_v26 = vld [vmem:[%s1090_s4 + $0x20] sm:$0xff]  ;;  %v340_v27 = vld [vmem:[%s1090_s4 + $0x18] sm:$0xff] }
   0xa   :  { %148 = vmatpush1.msra.mxu0 %v118_v9  ;;  %187 = vmatprep.mubr.f32.mxu0 %v846_v0  ;;  %v339_v28 = vld [vmem:[%s1090_s4 + $0x10] sm:$0xff]  ;;  %v338_v29 = vld [vmem:[%s1090_s4 + $0x8] sm:$0xff]  ;;  %v337_v30 = vld [vmem:[%s1090_s4] sm:$0xff] }
   0xb   :  { %149 = vmatprep.subr.mxu0 %v117_v10  ;;  %761 = vmatprep.subr.mxu1 %v846_v0  ;;  %v194_v31 = vld [vmem:[%s1094_s5] sm:$0xff]  ;;  %v195_v37 = vld [vmem:[%s1094_s5 + $0x8] sm:$0xff]  ;;  %v196_v38 = vld [vmem:[%s1094_s5 + $0x10] sm:$0xff] }
   0xc   :  { %150 = vmatpush1.msra.mxu0 %v116_v11  ;;  %762 = vmatpush3.msra.mxu1 %v349_v15  ;;  %v197_v39 = vld [vmem:[%s1094_s5 + $0x18] sm:$0xff]  ;;  %v198_v40 = vld [vmem:[%s1094_s5 + $0x20] sm:$0xff]  ;;  %v199_v41 = vld [vmem:[%s1094_s5 + $0x28] sm:$0xff] }
   0xd   :  { %151 = vmatprep.subr.mxu0 %v115_v13  ;;  %763 = vmatprep.subr.mxu1 %v846_v0  ;;  %v200_v42 = vld [vmem:[%s1094_s5 + $0x30] sm:$0xff]  ;;  %v201_v43 = vld [vmem:[%s1094_s5 + $0x38] sm:$0xff]  ;;  %v448_v6 = vld [vmem:[%s1095_s6] sm:$0xff] }
   0xe   :  { %152 = vmatpush1.msra.mxu0 %v114_v14  ;;  %764 = vmatpush3.msra.mxu1 %v348_v18  ;;  %v528_v8 = vld [vmem:[%s1096_s7 + $0x8] sm:$0xff]  ;;  %v527_v9 = vld [vmem:[%s1096_s7] sm:$0xff]  ;;  %s849_s7 = smov 127  }
   0xf   :  { %153 = vmatprep.subr.mxu0 %v113_v16  ;;  %765 = vmatprep.subr.mxu1 %v846_v0 }
  0x10   :  { %154 = vmatpush1.msra.mxu0 %v112_v17  ;;  %766 = vmatpush3.msra.mxu1 %v347_v20 }
  0x11   :  { %675 = vmatmul.mubr.msk.f32.vlgmr.msra.gmra.mxu0 %vm37_vm1, %v111_v19  ;;  %767 = vmatprep.subr.mxu1 %v846_v0 }
  0x12   :  { %768 = vmatpush3.msra.mxu1 %v346_v21  ;;  %743 = vmatprep.mubr.msk.f32.mxu0 %vm202_vm2, %v194_v31 }
  0x13   :  { %769 = vmatprep.subr.mxu1 %v846_v0 }
  0x14   :  { %770 = vmatpush3.msra.mxu1 %v345_v22 }
  0x15   :  { %771 = vmatprep.subr.mxu1 %v846_v0 }
  0x16   :  { %772 = vmatpush3.msra.mxu1 %v344_v23 }
  0x17   :  { %773 = vmatprep.subr.mxu1 %v846_v0 }
  0x18   :  { %774 = vmatpush3.msra.mxu1 %v343_v24 }
  0x19   :  { %775 = vmatprep.subr.mxu1 %v846_v0 }
  0x1a   :  { %776 = vmatpush3.msra.mxu1 %v342_v25 }
  0x1b   :  { %777 = vmatprep.subr.mxu1 %v846_v0 }
  0x1c   :  { %778 = vmatpush3.msra.mxu1 %v341_v26 }
  0x1d   :  { %779 = vmatprep.subr.mxu1 %v846_v0 }
  0x1e   :  { %780 = vmatpush3.msra.mxu1 %v340_v27 }
  0x1f   :  { %781 = vmatprep.subr.mxu1 %v846_v0 }
  0x20   :  { %782 = vmatpush3.msra.mxu1 %v339_v28 }
  0x21   :  { %783 = vmatprep.subr.mxu1 %v846_v0 }
  0x22   :  { %784 = vmatpush3.msra.mxu1 %v338_v29 }
  0x23   :  { %785 = vmatprep.subr.mxu1 %v846_v0 }
  0x24   :  { %786 = vmatpush3.msra.mxu1 %v337_v30 }
  0xc9   :  { %v107_v32 = vpop.f32.mrf.mxu0 }
  0xcb   :  { %v740_v33 = vpop.f32.mrf.mxu0 }
  0xd1   :  { %v189_v34 = vpop.f32.mrf.mxu0 }
  0xd2   :  { %v336_v35 = vmul.f32 %v189_v34, %v107_v32 }
  0xd3   :  { %v191_v36 = vpop.f32.mrf.mxu0 }
  0xd4   :  { %741 = vmatprep.subr.mxu0 %v191_v36  ;;  %788 = vmatmul.mubr.f32.vlgmr.msra.gmra.mxu1 %v336_v35 }
  0xd5   :  { %742 = vmatpush3.msra.mxu0 %v191_v36  ;;  %790 = vmatprep.mubr.msk.f32.mxu1 %vm847_vm0, %v846_v0 }
  0xd6   :  { %744 = vmatmul.mubr.msk.f32.vlgmr.msra.gmra.mxu0 %vm202_vm2, %v195_v37  ;;  %802 = vmatprep.subr.mxu0 %v846_v0 }
  0xd7   :  { %746 = vmatprep.mubr.msk.f32.mxu0 %vm202_vm2, %v196_v38 }
  0xda   :  { %747 = vmatmul.mubr.msk.f32.gmra.mxu0 %vm202_vm2, %v197_v39 }
  0xdb   :  { %749 = vmatprep.mubr.msk.f32.mxu0 %vm202_vm2, %v198_v40 }
  0xde   :  { %750 = vmatmul.mubr.msk.f32.gmra.mxu0 %vm202_vm2, %v199_v41 }
  0xdf   :  { %752 = vmatprep.mubr.msk.f32.mxu0 %vm202_vm2, %v200_v42 }
  0xe2   :  { %753 = vmatmul.mubr.msk.f32.gmra.mxu0 %vm202_vm2, %v201_v43 }
  0xe3   :  { %810 = vmatprep.mubr.msk.f32.mxu0 %vm847_vm0, %v846_v0 }
 0x194   :  { %v419_v44 = vpop.f32.mrf.mxu1 }
 0x196   :  { %v745_v45 = vpop.f32.mrf.mxu0  ;;  %v789_v46 = vpop.f32.mrf.mxu1 }
 0x198   :  { %v293_v47 = vpop.f32.mrf.mxu0 }
 0x19a   :  { %v748_v48 = vpop.f32.mrf.mxu0 }
 0x19c   :  { %v303_v49 = vpop.f32.mrf.mxu0 }
 0x19e   :  { %v751_v50 = vpop.f32.mrf.mxu0 }
 0x19f   :  { %v333_v54 = vmul.f32 %v751_v50, %v745_v45 }
 0x1a0   :  { %v313_v51 = vpop.f32.mrf.mxu0 }
 0x1a1   :  { %v332_v52 = vmul.f32 %v313_v51, %v293_v47 }
 0x1a2   :  { %v754_v53 = vpop.f32.mrf.mxu0 }
 0x1a3   :  { %791 = vmatmul.mubr.f32.gmra.mxu1 %v332_v52  ;;  %v335_v57 = vmul.f32 %v754_v53, %v748_v48 }
 0x1a4   :  { %793 = vmatprep.mubr.msk.f32.mxu1 %vm847_vm0, %v846_v0  ;;  %v323_v55 = vpop.f32.mrf.mxu0 }
 0x1a5   :  { %v334_v56 = vmul.f32 %v323_v55, %v303_v49 }
 0x1a7   :  { %794 = vmatmul.mubr.f32.gmra.mxu1 %v333_v54 }
 0x1a8   :  { %796 = vmatprep.mubr.msk.f32.mxu1 %vm847_vm0, %v846_v0 }
 0x1ab   :  { %797 = vmatmul.mubr.f32.gmra.mxu1 %v334_v56 }
 0x1ac   :  { %799 = vmatprep.mubr.msk.f32.mxu1 %vm847_vm0, %v846_v0 }
 0x1af   :  { %800 = vmatmul.mubr.f32.gmra.mxu1 %v335_v57 }
 0x263   :  { %v424_v58 = vpop.f32.mrf.mxu1 }
 0x265   :  { %v792_v59 = vpop.f32.mrf.mxu1 }
 0x267   :  { %v429_v60 = vpop.f32.mrf.mxu1 }
 0x269   :  { %v795_v61 = vpop.f32.mrf.mxu1 }
 0x26b   :  { %v434_v62 = vpop.f32.mrf.mxu1 }
 0x26d   :  { %v798_v63 = vpop.f32.mrf.mxu1 }
 0x26f   :  { %v439_v1 = vpop.f32.mrf.mxu1 }
 0x270   :  { %828 = vtanh.f32 %v439_v1 }
 0x271   :  { %v801_v2 = vpop.f32.mrf.mxu1  ;;  %830 = vtanh.f32 %v434_v62 }
 0x272   :  { %832 = vtanh.f32 %v429_v60 }
 0x273   :  { %834 = vtanh.f32 %v424_v58 }
 0x274   :  { %836 = vtanh.f32 %v419_v44 }
 0x27d   :  { %v829_v3 = vpop.eup %828 }
 0x27e   :  { %803 = vmatpush3.msra.mxu0 %v829_v3  ;;  %v831_v4 = vpop.eup %830 }
 0x27f   :  { %804 = vmatprep.subr.mxu0 %v846_v0  ;;  %v833_v5 = vpop.eup %832 }
 0x280   :  { %805 = vmatpush3.msra.mxu0 %v831_v4  ;;  %v835_v7 = vpop.eup %834 }
 0x281   :  { %806 = vmatprep.subr.mxu0 %v846_v0  ;;  %v837_v12 = vpop.eup %836 }
 0x282   :  { %807 = vmatpush3.msra.mxu0 %v833_v5 }
 0x283   :  { %808 = vmatprep.subr.mxu0 %v846_v0 }
 0x284   :  { %809 = vmatpush3.msra.mxu0 %v835_v7 }
 0x285   :  { %811 = vmatmul.mubr.msk.f32.vlgmr.msra.gmra.mxu0 %vm37_vm1, %v448_v6  ;;  %813 = vmatprep.subr.mxu0 %v846_v0 }
 0x286   :  { %817 = vmatprep.mubr.msk.f32.mxu0 %vm847_vm0, %v846_v0  ;;  %814 = vmatpush3.msra.mxu0 %v528_v8 }
 0x287   :  { %815 = vmatprep.subr.mxu0 %v846_v0  ;;  %v685_v0 = vld [vmem:[%s1097_s8] ss:$0 sm:$0xff]  ;;  %s852_s8 = smov 2  }
 0x288   :  { %816 = vmatpush3.msra.mxu0 %v527_v9 }
 0x345   :  { %v518_v10 = vpop.f32.mrf.mxu0 }
 0x346   :  { %523 = vrot.lane.b32.xlu0 %v518_v10, %s848_s15 }
 0x347   :  { %v812_v11 = vpop.f32.mrf.mxu0 }
 0x3b8   :  { %v524_v13 = vpop.permute.xlu0 %523 }
 0x3b9   :  { %v526_v14 = vsel %vm202_vm2, %v837_v12, %v524_v13 }
 0x3ba   :  { %818 = vmatmul.mubr.msk.f32.vlgmr.msra.gmra.mxu0 %vm536_vm3, %v526_v14 }
 0x47a   :  { %v606_v15 = vpop.f32.mrf.mxu0 }
 0x47b   :  { %v607_v16 = vadd.f32 %v685_v0, %v606_v15 }
 0x47c   :  { %v819_v17 = vpop.f32.mrf.mxu0 }
 0x47d   :  { %632 = vrot.lane.b32.xlu1 %v607_v16, %s849_s7  ;;  %611 = vrot.lane.b32.xlu0 %v607_v16, %s850_s18 }
 0x4ef   :  { %v633_v18 = vpop.permute.xlu1 %632  ;;  %v612_v19 = vpop.permute.xlu0 %611 }
 0x4f0   :  { %v635_v20 = vsub.f32 %v607_v16, %v633_v18  ;;  %v614_v21 = vadd.f32 %v612_v19, %v607_v16 }
 0x4f2   :  { %v636_v22 = vmul.f32 1.442695, %v635_v20  ;;  %616 = vrot.lane.b32.xlu1 %v614_v21, %s849_s7 }
 0x4f4   :  { %838 = vpow2.f32 %v636_v22 }
 0x501   :  { %v839_v23 = vpop.eup %838 }
 0x502   :  { %v638_v24 = vadd.f32 1.0, %v839_v23 }
 0x504   :  { %840 = vrcp.f32 %v638_v24 }
 0x511   :  { %v841_v25 = vpop.eup %840 }
 0x512   :  { %643 = vrot.lane.b32.xlu0 %v841_v25, %s851_s19  ;;  %v641_v26 = vsub.f32 1.0, %v841_v25 }
 0x514   :  { %648 = vrot.lane.b32.xlu1 %v641_v26, %s850_s18 }
 0x516   :  { %651 = vrot.lane.b32.xlu0 %v841_v25, %s849_s7 }
 0x564   :  { %v617_v27 = vpop.permute.xlu1 %616 }
 0x565   :  { %v619_v28 = vsub.f32 %v614_v21, %v617_v27 }
 0x567   :  { %v620_v29 = vmul.f32 1.442695, %v619_v28 }
 0x569   :  { %842 = vpow2.f32 %v620_v29 }
 0x576   :  { %v843_v30 = vpop.eup %842 }
 0x577   :  { %v622_v31 = vadd.f32 1.0, %v843_v30 }
 0x579   :  { %844 = vrcp.f32 %v622_v31 }
 0x584   :  { %v644_v32 = vpop.permute.xlu0 %643 }
 0x585   :  { %v646_v33 = vsel %vm630_vm4, %v641_v26, %v644_v32 }
 0x586   :  { %v845_v34 = vpop.eup %844  ;;  %656 = vrot.lane.b32.xlu0 %v646_v33, %s852_s8  ;;  %v649_v35 = vpop.permute.xlu1 %648 }
 0x587   :  { %627 = vrot.lane.b32.xlu1 %v845_v34, %s851_s19  ;;  %v625_v38 = vsub.f32 1.0, %v845_v34 }
 0x588   :  { %v652_v36 = vpop.permute.xlu0 %651 }
 0x589   :  { %v654_v37 = vsel %vm630_vm4, %v649_v35, %v652_v36 }
 0x58b   :  { %660 = vrot.lane.b32.xlu1 %v654_v37, %s853_s20 }
 0x5f8   :  { %v657_v41 = vpop.permute.xlu0 %656 }
 0x5f9   :  { %v628_v39 = vpop.permute.xlu1 %627 }
 0x5fa   :  { %v631_v40 = vsel %vm630_vm4, %v625_v38, %v628_v39 }
 0x5fb   :  { %v664_v43 = vsel %vm663_vm5, %v631_v40, %v657_v41 }
 0x5fd   :  { %v661_v42 = vpop.permute.xlu1 %660 }
 0x5fe   :  { %v666_v44 = vsel %vm665_vm6, %v664_v43, %v661_v42 }
 0x5ff   :  { %v668_v45 = vsel %vm667_vm7, %v666_v44, 0.0 }
 0x600   :  { %669 = vst.msk [vmem:[%s1098_s9] sm:$0xff] %vm202_vm2, %v668_v45 }

</bundles_post_ra>
